<compile_context>
chip_gen: v6e
topology: v6e:2x2x1
jax: 0.10.0
libtpu: 0.0.40
codegen_flags: <defaults>
</compile_context>

<pallas_src>
import math
import functools

import jax
import jax.numpy as jnp
from jax.experimental import pallas as pl
from jax.experimental.pallas import tpu as pltpu


# ----------------------------------------------------------------------------
# Fused MHA kernel (one grid step per batch block)
# ----------------------------------------------------------------------------
def fused_mha_kernel(q_ref, k_ref, v_ref, wq_ref, bq_ref, wf_ref, bf_ref, o_ref,
                     *, num_heads):
    # q_ref/k_ref/v_ref/o_ref blocks: (Bblk, S, D)
    # wq_ref: (D, D) pre-transposed to (Din, Dout); bq_ref/bf_ref: (1, D) f32
    # wf_ref: (H, d_k, D) fc weight pre-split per head.
    b_blk, S, D = q_ref.shape
    dk = D // num_heads
    scale = 1.0 / math.sqrt(dk)
    cdt = wq_ref.dtype                      # MXU operand dtype (bf16 -> fast path)
    N = b_blk * S

    w = wq_ref[...]                         # resident across grid steps
    bq = bq_ref[...]

    # ---- q/k/v projections: three back-to-back (N, D) @ (D, D) MXU matmuls
    # against the resident weight; no (3N, D) staging concat, and each f32
    # result is downcast immediately (only one (N, D) f32 tensor live at once).
    def project(ref, scl=None):
        x = ref[...].reshape(N, D).astype(cdt)      # leading-dim reshape: free
        y = jnp.dot(x, w, preferred_element_type=jnp.float32) + bq
        if scl is not None:
            y = y * scl                             # fold 1/sqrt(d_k) into q (in f32)
        return y.astype(cdt)

    qf = project(q_ref, scale)
    kf = project(k_ref)
    vf = project(v_ref)

    wf3 = wf_ref[...]                       # (H, d_k, D)
    for b in range(b_blk):                  # b_blk is small; the grid carries the rest
        r = b * S
        # Heads-batched attention: slice+stack the head windows once, then one
        # batched QK^T, one batched f32 softmax and one batched PV matmul (no
        # per-head MXU pushes / per-head softmax bodies).
        # TODO(synk): for D >= 128, replace slice+stack with a lane-layout-aware
        # reshape (pltpu.einshape) to drop the per-head relayouts entirely.
        qh = jnp.stack([qf[r:r + S, h * dk:(h + 1) * dk] for h in range(num_heads)], axis=0)
        kh = jnp.stack([kf[r:r + S, h * dk:(h + 1) * dk] for h in range(num_heads)], axis=0)
        vh = jnp.stack([vf[r:r + S, h * dk:(h + 1) * dk] for h in range(num_heads)], axis=0)

        s = jnp.einsum("hqd,hkd->hqk", qh, kh, preferred_element_type=jnp.float32)
        m = jnp.max(s, axis=-1, keepdims=True)          # f32 softmax (v5e: no bf16 VPU)
        e = jnp.exp(s - m)
        inv = pl.reciprocal(jnp.sum(e, axis=-1, keepdims=True), approx=True)
        attn = (e * inv).astype(cdt)

        ctx = jnp.einsum("hqk,hkd->hqd", attn, vh,
                         preferred_element_type=jnp.float32).astype(cdt)   # (H, S, d_k)

        # ---- head merge fused with the output projection:
        #   out = sum_h ctx[h] @ Wf^T[h*dk:(h+1)*dk, :] + bf
        # (heads-batched matmul + leading-axis sum; no lane-axis head concat)
        out = jnp.einsum("hqd,hdo->hqo", ctx, wf3, preferred_element_type=jnp.float32)
        out = jnp.sum(out, axis=0) + bf_ref[...]
        # TODO(synk): if d_model stays < 128 in production, present a lane-dense
        # (B, S*D/128, 128) output layout from the wrapper to replace masked
        # partial stores here.
        o_ref[b] = out.astype(o_ref.dtype)


# ----------------------------------------------------------------------------
# Wrapper
# ----------------------------------------------------------------------------
def mha_forward(params, q, k, v, num_heads, *, matmul_dtype=None):
    """q/k/v: (B, S, D).  Weights given in torch (Dout, Din) layout."""
    B, S, D = q.shape
    assert D % num_heads == 0
    dk = D // num_heads
    wq, bq = params["query"]
    wf, bf = params["fc"]

    # One-time (outside-kernel) weight prep:
    #  * wqT (Din, Dout): in-kernel projections become plain `x @ w` (no per-step
    #    weight transpose/relayout).
    #  * wf3 (H, d_k, Dout): fc weight pre-split per head so the head merge and
    #    output projection fuse into one heads-batched matmul in the kernel.
    wqT = jnp.asarray(wq).T
    wf3 = jnp.asarray(wf).T.reshape(num_heads, dk, D)
    bq2 = jnp.asarray(bq, jnp.float32).reshape(1, D)
    bf2 = jnp.asarray(bf, jnp.float32).reshape(1, D)
    if matmul_dtype is not None:
        wqT = wqT.astype(matmul_dtype)
        wf3 = wf3.astype(matmul_dtype)

    # Grid granularity: a 2-step "parallel" axis when B allows it (keeps both
    # v7x TensorCores busy); the rest of the batch is folded into the block to
    # cut per-step pipeline overhead on the single-TC v5e/v6e.
    grid_b = 2 if (B % 2 == 0) else 1
    b_blk = B // grid_b

    act_spec = pl.BlockSpec((b_blk, S, D), lambda g: (g, 0, 0))
    wq_spec = pl.BlockSpec((D, D), lambda g: (0, 0))               # constant -> resident
    wf_spec = pl.BlockSpec((num_heads, dk, D), lambda g: (0, 0, 0))
    b_spec = pl.BlockSpec((1, D), lambda g: (0, 0))

    # Rough per-step VMEM footprint; raise the scoped limit only when the
    # default (16 MiB v5e / 32 MiB v6e, v7x) would be exceeded.
    itm = jnp.dtype(q.dtype).itemsize
    blk = b_blk * S * D
    need = (2 * 4 * blk * itm                                        # dbl-buffered q/k/v/out blocks
            + 2 * (2 * D * D + 2 * D) * jnp.dtype(wqT.dtype).itemsize  # resident weights/biases
            + 4 * (blk + b_blk * num_heads * S * (2 * S + dk + D)))  # f32 intermediates
    vmem_limit = None if need <= (12 << 20) else min(int(need * 3 // 2), 96 << 20)

    return pl.pallas_call(
        functools.partial(fused_mha_kernel, num_heads=num_heads),
        out_shape=jax.ShapeDtypeStruct((B, S, D), q.dtype),
        grid=(grid_b,),
        in_specs=[act_spec, act_spec, act_spec, wq_spec, b_spec, wf_spec, b_spec],
        out_specs=pl.BlockSpec((b_blk, S, D), lambda g: (g, 0, 0)),
        compiler_params=pltpu.CompilerParams(
            dimension_semantics=("parallel",),
            vmem_limit_bytes=vmem_limit),
    )(q, k, v, wqT, bq2, wf3, bf2)


# ----------------------------------------------------------------------------
# Pure-JAX reference (for correctness check)
# ----------------------------------------------------------------------------
def mha_reference(params, q, k, v, num_heads):
    B, S, D = q.shape
    d_k = D // num_heads
    wq, bq = params["query"]
    wf, bf = params["fc"]

    def proj(x):
        y = x @ wq.T + bq
        return y.reshape(B, -1, num_heads, d_k).transpose(0, 2, 1, 3)

    qp, kp, vp = proj(q), proj(k), proj(v)
    scores = jnp.einsum("bhqd,bhkd->bhqk", qp, kp) / math.sqrt(d_k)
    attn = jax.nn.softmax(scores, axis=-1)
    x = jnp.einsum("bhqk,bhkd->bhqd", attn, vp)
    x = x.transpose(0, 2, 1, 3).reshape(B, -1, D)
    return x @ wf.T + bf


# ----------------------------------------------------------------------------
# Main
# ----------------------------------------------------------------------------
if __name__ == "__main__":
    d_model, num_heads = 32, 4
    batch, seq = 2, 8

    key = jax.random.PRNGKey(0)
    ks = jax.random.split(key, 12)

    def init_linear(kw, kb, fan_in, fan_out):
        bound = 1.0 / math.sqrt(fan_in)
        w = jax.random.uniform(kw, (fan_out, fan_in), jnp.float32, -bound, bound)
        b = jax.random.uniform(kb, (fan_out,), jnp.float32, -bound, bound)
        return w, b

    params = {
        "query": init_linear(ks[0], ks[1], d_model, d_model),
        "keys": init_linear(ks[2], ks[3], d_model, d_model),    # dead params, as in ref
        "values": init_linear(ks[4], ks[5], d_model, d_model),  # dead params, as in ref
        "fc": init_linear(ks[6], ks[7], d_model, d_model),
    }

    q = jax.random.normal(ks[8], (batch, seq, d_model), jnp.float32)
    k = jax.random.normal(ks[9], (batch, seq, d_model), jnp.float32)
    v = jax.random.normal(ks[10], (batch, seq, d_model), jnp.float32)

    ref = mha_reference(params, q, k, v, num_heads)

    # ---- f32 path (tolerance loosened slightly for approx reciprocal)
    out = jax.block_until_ready(mha_forward(params, q, k, v, num_heads))
    assert out.shape == (batch, seq, d_model)
    assert jnp.allclose(out, ref, atol=2e-3, rtol=2e-3), "f32 mismatch vs reference"

    # ---- f32 inputs, bf16 MXU operands (full-rate MXU on v6e/v7x, f32 accumulation)
    out_mx = jax.block_until_ready(
        mha_forward(params, q, k, v, num_heads, matmul_dtype=jnp.bfloat16))
    assert out_mx.shape == (batch, seq, d_model)
    assert jnp.allclose(out_mx, ref, atol=1e-1, rtol=1e-1), "bf16-MXU mismatch vs reference"

    # ---- full bf16 inputs/params path
    params_bf16 = jax.tree_util.tree_map(lambda a: a.astype(jnp.bfloat16), params)
    out_bf16 = jax.block_until_ready(
        mha_forward(params_bf16,
                    q.astype(jnp.bfloat16),
                    k.astype(jnp.bfloat16),
                    v.astype(jnp.bfloat16),
                    num_heads))
    assert out_bf16.shape == (batch, seq, d_model)
    assert jnp.allclose(out_bf16.astype(jnp.float32), ref, atol=1e-1, rtol=1e-1), \
        "bf16 mismatch vs reference"

    print("KERNEL_OK")
</pallas_src>

<mosaic_0001>
module attributes {stable_mosaic.version = 11 : i64} {
  func.func @fused_mha_kernel(%arg0: i32, %arg1: memref<1x8x32xf32, #tpu.memory_space<vmem>>, %arg2: memref<1x8x32xf32, #tpu.memory_space<vmem>>, %arg3: memref<1x8x32xf32, #tpu.memory_space<vmem>>, %arg4: memref<32x32xf32, #tpu.memory_space<vmem>>, %arg5: memref<1x32xf32, #tpu.memory_space<vmem>>, %arg6: memref<4x8x32xf32, #tpu.memory_space<vmem>>, %arg7: memref<1x32xf32, #tpu.memory_space<vmem>>, %arg8: memref<1x8x32xf32, #tpu.memory_space<vmem>>) attributes {dimension_semantics = [#tpu.dimension_semantics<parallel>], iteration_bounds = array<i64: 2>, scalar_prefetch = 0 : i64, scratch_operands = 0 : i64, tpu.core_type = #tpu.core_type<tc>, window_params = [{transform_indices = @transform_0, window_bounds = array<i64: 1, 8, 32>}, {transform_indices = @transform_1, window_bounds = array<i64: 1, 8, 32>}, {transform_indices = @transform_2, window_bounds = array<i64: 1, 8, 32>}, {pipeline_mode = #tpu.pipeline_mode<synchronous>, transform_indices = @transform_3, window_bounds = array<i64: 32, 32>}, {pipeline_mode = #tpu.pipeline_mode<synchronous>, transform_indices = @transform_4, window_bounds = array<i64: 1, 32>}, {pipeline_mode = #tpu.pipeline_mode<synchronous>, transform_indices = @transform_5, window_bounds = array<i64: 4, 8, 32>}, {pipeline_mode = #tpu.pipeline_mode<synchronous>, transform_indices = @transform_6, window_bounds = array<i64: 1, 32>}, {transform_indices = @transform_7, window_bounds = array<i64: 1, 8, 32>}]} {
    %c0 = arith.constant 0 : index
    %c0_0 = arith.constant 0 : index
    %0 = vector.load %arg4[%c0, %c0_0] : memref<32x32xf32, #tpu.memory_space<vmem>>, vector<32x32xf32>
    %c0_1 = arith.constant 0 : index
    %c0_2 = arith.constant 0 : index
    %1 = vector.load %arg5[%c0_1, %c0_2] : memref<1x32xf32, #tpu.memory_space<vmem>>, vector<1x32xf32>
    %c0_3 = arith.constant 0 : index
    %c0_4 = arith.constant 0 : index
    %c0_5 = arith.constant 0 : index
    %2 = vector.load %arg1[%c0_3, %c0_4, %c0_5] : memref<1x8x32xf32, #tpu.memory_space<vmem>>, vector<1x8x32xf32>
    %3 = vector.shape_cast %2 : vector<1x8x32xf32> to vector<8x32xf32>
    %cst = arith.constant dense<0.000000e+00> : vector<8x32xf32>
    %4 = tpu.matmul %3, %0, %cst {dimension_numbers = #tpu.dot_dimension_numbers<[1], [0], [0], [1], [0, 0, 1, 1], [], []>} : vector<8x32xf32>, vector<32x32xf32>, vector<8x32xf32> -> vector<8x32xf32>
    %5 = vector.broadcast %1 : vector<1x32xf32> to vector<8x32xf32>
    %6 = arith.addf %4, %5 : vector<8x32xf32>
    %cst_6 = arith.constant 0.353553385 : f32
    %7 = vector.broadcast %cst_6 : f32 to vector<8x32xf32>
    %8 = arith.mulf %6, %7 : vector<8x32xf32>
    %c0_7 = arith.constant 0 : index
    %c0_8 = arith.constant 0 : index
    %c0_9 = arith.constant 0 : index
    %9 = vector.load %arg2[%c0_7, %c0_8, %c0_9] : memref<1x8x32xf32, #tpu.memory_space<vmem>>, vector<1x8x32xf32>
    %10 = vector.shape_cast %9 : vector<1x8x32xf32> to vector<8x32xf32>
    %cst_10 = arith.constant dense<0.000000e+00> : vector<8x32xf32>
    %11 = tpu.matmul %10, %0, %cst_10 {dimension_numbers = #tpu.dot_dimension_numbers<[1], [0], [0], [1], [0, 0, 1, 1], [], []>} : vector<8x32xf32>, vector<32x32xf32>, vector<8x32xf32> -> vector<8x32xf32>
    %12 = vector.broadcast %1 : vector<1x32xf32> to vector<8x32xf32>
    %13 = arith.addf %11, %12 : vector<8x32xf32>
    %c0_11 = arith.constant 0 : index
    %c0_12 = arith.constant 0 : index
    %c0_13 = arith.constant 0 : index
    %14 = vector.load %arg3[%c0_11, %c0_12, %c0_13] : memref<1x8x32xf32, #tpu.memory_space<vmem>>, vector<1x8x32xf32>
    %15 = vector.shape_cast %14 : vector<1x8x32xf32> to vector<8x32xf32>
    %cst_14 = arith.constant dense<0.000000e+00> : vector<8x32xf32>
    %16 = tpu.matmul %15, %0, %cst_14 {dimension_numbers = #tpu.dot_dimension_numbers<[1], [0], [0], [1], [0, 0, 1, 1], [], []>} : vector<8x32xf32>, vector<32x32xf32>, vector<8x32xf32> -> vector<8x32xf32>
    %17 = vector.broadcast %1 : vector<1x32xf32> to vector<8x32xf32>
    %18 = arith.addf %16, %17 : vector<8x32xf32>
    %c0_15 = arith.constant 0 : index
    %c0_16 = arith.constant 0 : index
    %c0_17 = arith.constant 0 : index
    %19 = vector.load %arg6[%c0_15, %c0_16, %c0_17] : memref<4x8x32xf32, #tpu.memory_space<vmem>>, vector<4x8x32xf32>
    %20 = vector.extract_strided_slice %8 {offsets = [0, 0], sizes = [8, 8], strides = [1, 1]} : vector<8x32xf32> to vector<8x8xf32>
    %21 = vector.extract_strided_slice %8 {offsets = [0, 8], sizes = [8, 8], strides = [1, 1]} : vector<8x32xf32> to vector<8x8xf32>
    %22 = vector.extract_strided_slice %8 {offsets = [0, 16], sizes = [8, 8], strides = [1, 1]} : vector<8x32xf32> to vector<8x8xf32>
    %23 = vector.extract_strided_slice %8 {offsets = [0, 24], sizes = [8, 8], strides = [1, 1]} : vector<8x32xf32> to vector<8x8xf32>
    %24 = vector.shape_cast %20 : vector<8x8xf32> to vector<1x8x8xf32>
    %25 = vector.shape_cast %21 : vector<8x8xf32> to vector<1x8x8xf32>
    %26 = vector.shape_cast %22 : vector<8x8xf32> to vector<1x8x8xf32>
    %27 = vector.shape_cast %23 : vector<8x8xf32> to vector<1x8x8xf32>
    %28 = tpu.concatenate %24, %25, %26, %27 in 0 : vector<1x8x8xf32>, vector<1x8x8xf32>, vector<1x8x8xf32>, vector<1x8x8xf32> -> vector<4x8x8xf32>
    %29 = vector.extract_strided_slice %13 {offsets = [0, 0], sizes = [8, 8], strides = [1, 1]} : vector<8x32xf32> to vector<8x8xf32>
    %30 = vector.extract_strided_slice %13 {offsets = [0, 8], sizes = [8, 8], strides = [1, 1]} : vector<8x32xf32> to vector<8x8xf32>
    %31 = vector.extract_strided_slice %13 {offsets = [0, 16], sizes = [8, 8], strides = [1, 1]} : vector<8x32xf32> to vector<8x8xf32>
    %32 = vector.extract_strided_slice %13 {offsets = [0, 24], sizes = [8, 8], strides = [1, 1]} : vector<8x32xf32> to vector<8x8xf32>
    %33 = vector.shape_cast %29 : vector<8x8xf32> to vector<1x8x8xf32>
    %34 = vector.shape_cast %30 : vector<8x8xf32> to vector<1x8x8xf32>
    %35 = vector.shape_cast %31 : vector<8x8xf32> to vector<1x8x8xf32>
    %36 = vector.shape_cast %32 : vector<8x8xf32> to vector<1x8x8xf32>
    %37 = tpu.concatenate %33, %34, %35, %36 in 0 : vector<1x8x8xf32>, vector<1x8x8xf32>, vector<1x8x8xf32>, vector<1x8x8xf32> -> vector<4x8x8xf32>
    %38 = vector.extract_strided_slice %18 {offsets = [0, 0], sizes = [8, 8], strides = [1, 1]} : vector<8x32xf32> to vector<8x8xf32>
    %39 = vector.extract_strided_slice %18 {offsets = [0, 8], sizes = [8, 8], strides = [1, 1]} : vector<8x32xf32> to vector<8x8xf32>
    %40 = vector.extract_strided_slice %18 {offsets = [0, 16], sizes = [8, 8], strides = [1, 1]} : vector<8x32xf32> to vector<8x8xf32>
    %41 = vector.extract_strided_slice %18 {offsets = [0, 24], sizes = [8, 8], strides = [1, 1]} : vector<8x32xf32> to vector<8x8xf32>
    %42 = vector.shape_cast %38 : vector<8x8xf32> to vector<1x8x8xf32>
    %43 = vector.shape_cast %39 : vector<8x8xf32> to vector<1x8x8xf32>
    %44 = vector.shape_cast %40 : vector<8x8xf32> to vector<1x8x8xf32>
    %45 = vector.shape_cast %41 : vector<8x8xf32> to vector<1x8x8xf32>
    %46 = tpu.concatenate %42, %43, %44, %45 in 0 : vector<1x8x8xf32>, vector<1x8x8xf32>, vector<1x8x8xf32>, vector<1x8x8xf32> -> vector<4x8x8xf32>
    "tpu.trace_start"() <{level = 10 : i32, message = "hqd,hkd->hqk"}> : () -> ()
    %cst_18 = arith.constant dense<0.000000e+00> : vector<4x8x8xf32>
    %47 = tpu.matmul %28, %37, %cst_18 {dimension_numbers = #tpu.dot_dimension_numbers<[2], [2], [1], [1], [0, 0, 0, 1, 1, 1], [0], [0]>} : vector<4x8x8xf32>, vector<4x8x8xf32>, vector<4x8x8xf32> -> vector<4x8x8xf32>
    "tpu.trace_stop"() : () -> ()
    %cst_19 = arith.constant dense<0xFF800000> : vector<4x8xf32>
    %48 = vector.multi_reduction <maximumf>, %47, %cst_19 [2] : vector<4x8x8xf32> to vector<4x8xf32>
    %49 = vector.shape_cast %48 : vector<4x8xf32> to vector<4x8x1xf32>
    %50 = vector.broadcast %49 : vector<4x8x1xf32> to vector<4x8x8xf32>
    %51 = arith.subf %47, %50 : vector<4x8x8xf32>
    %52 = math.exp %51 : vector<4x8x8xf32>
    %cst_20 = arith.constant dense<0.000000e+00> : vector<4x8xf32>
    %53 = vector.multi_reduction <add>, %52, %cst_20 [2] : vector<4x8x8xf32> to vector<4x8xf32>
    %54 = vector.shape_cast %53 : vector<4x8xf32> to vector<4x8x1xf32>
    %55 = tpu.reciprocal %54 {approx = true} : vector<4x8x1xf32> -> vector<4x8x1xf32>
    %56 = vector.broadcast %55 : vector<4x8x1xf32> to vector<4x8x8xf32>
    %57 = arith.mulf %52, %56 : vector<4x8x8xf32>
    "tpu.trace_start"() <{level = 10 : i32, message = "hqk,hkd->hqd"}> : () -> ()
    %cst_21 = arith.constant dense<0.000000e+00> : vector<4x8x8xf32>
    %58 = tpu.matmul %57, %46, %cst_21 {dimension_numbers = #tpu.dot_dimension_numbers<[2], [1], [1], [2], [0, 0, 0, 1, 1, 2], [0], [0]>} : vector<4x8x8xf32>, vector<4x8x8xf32>, vector<4x8x8xf32> -> vector<4x8x8xf32>
    "tpu.trace_stop"() : () -> ()
    "tpu.trace_start"() <{level = 10 : i32, message = "hqd,hdo->hqo"}> : () -> ()
    %cst_22 = arith.constant dense<0.000000e+00> : vector<4x8x32xf32>
    %59 = tpu.matmul %58, %19, %cst_22 {dimension_numbers = #tpu.dot_dimension_numbers<[2], [1], [1], [2], [0, 0, 0, 1, 1, 2], [0], [0]>} : vector<4x8x8xf32>, vector<4x8x32xf32>, vector<4x8x32xf32> -> vector<4x8x32xf32>
    "tpu.trace_stop"() : () -> ()
    %cst_23 = arith.constant dense<0.000000e+00> : vector<8x32xf32>
    %60 = vector.multi_reduction <add>, %59, %cst_23 [0] : vector<4x8x32xf32> to vector<8x32xf32>
    %c0_24 = arith.constant 0 : index
    %c0_25 = arith.constant 0 : index
    %61 = vector.load %arg7[%c0_24, %c0_25] : memref<1x32xf32, #tpu.memory_space<vmem>>, vector<1x32xf32>
    %62 = vector.broadcast %61 : vector<1x32xf32> to vector<8x32xf32>
    %63 = arith.addf %60, %62 : vector<8x32xf32>
    %c0_26 = arith.constant 0 : index
    %c0_27 = arith.constant 0 : index
    %c0_28 = arith.constant 0 : index
    %64 = vector.load %arg8[%c0_26, %c0_27, %c0_28] : memref<1x8x32xf32, #tpu.memory_space<vmem>>, vector<1x8x32xf32>
    %65 = vector.shape_cast %64 : vector<1x8x32xf32> to vector<8x32xf32>
    %66 = vector.shape_cast %63 : vector<8x32xf32> to vector<1x8x32xf32>
    tpu.vector_store %arg8[%c0_26, %c0_27, %c0_28], %66 {strides = array<i32>} : memref<1x8x32xf32, #tpu.memory_space<vmem>>, vector<1x8x32xf32>,
    return
  }
  func.func @transform_0(%arg0: i32) -> (i32, i32, i32) {
    %c0_i32 = arith.constant 0 : i32
    %c0_i32_0 = arith.constant 0 : i32
    %c0_i32_1 = arith.constant 0 : i32
    return %arg0, %c0_i32, %c0_i32_0 : i32, i32, i32
  }
  func.func @transform_1(%arg0: i32) -> (i32, i32, i32) {
    %c0_i32 = arith.constant 0 : i32
    %c0_i32_0 = arith.constant 0 : i32
    %c0_i32_1 = arith.constant 0 : i32
    return %arg0, %c0_i32, %c0_i32_0 : i32, i32, i32
  }
  func.func @transform_2(%arg0: i32) -> (i32, i32, i32) {
    %c0_i32 = arith.constant 0 : i32
    %c0_i32_0 = arith.constant 0 : i32
    %c0_i32_1 = arith.constant 0 : i32
    return %arg0, %c0_i32, %c0_i32_0 : i32, i32, i32
  }
  func.func @transform_3(%arg0: i32) -> (i32, i32) {
    %c0_i32 = arith.constant 0 : i32
    %c0_i32_0 = arith.constant 0 : i32
    %c0_i32_1 = arith.constant 0 : i32
    return %c0_i32, %c0_i32_0 : i32, i32
  }
  func.func @transform_4(%arg0: i32) -> (i32, i32) {
    %c0_i32 = arith.constant 0 : i32
    %c0_i32_0 = arith.constant 0 : i32
    %c0_i32_1 = arith.constant 0 : i32
    return %c0_i32, %c0_i32_0 : i32, i32
  }
  func.func @transform_5(%arg0: i32) -> (i32, i32, i32) {
    %c0_i32 = arith.constant 0 : i32
    %c0_i32_0 = arith.constant 0 : i32
    %c0_i32_1 = arith.constant 0 : i32
    %c0_i32_2 = arith.constant 0 : i32
    return %c0_i32, %c0_i32_0, %c0_i32_1 : i32, i32, i32
  }
  func.func @transform_6(%arg0: i32) -> (i32, i32) {
    %c0_i32 = arith.constant 0 : i32
    %c0_i32_0 = arith.constant 0 : i32
    %c0_i32_1 = arith.constant 0 : i32
    return %c0_i32, %c0_i32_0 : i32, i32
  }
  func.func @transform_7(%arg0: i32) -> (i32, i32, i32) {
    %c0_i32 = arith.constant 0 : i32
    %c0_i32_0 = arith.constant 0 : i32
    %c0_i32_1 = arith.constant 0 : i32
    return %arg0, %c0_i32, %c0_i32_0 : i32, i32, i32
  }
}

</mosaic_0001>

<bundles_post_ra>
// kernel: tpu_custom_call.1
= control target key start
LH: loop header
LB: loop body
LE: loop exit
PB: predicated region body
PF: predicated region fallthrough
CT: control target
= control target key end

     0   :  { %s2632_s0 = inlined_call_operand.hbm [shape: f32[2,8,32], index: 0, kind: input, shape index: {}]   ;;  %s2633_s1 = inlined_call_operand.hbm [shape: f32[2,8,32], index: 1, kind: input, shape index: {}]   ;;  %s2634_s2 = inlined_call_operand.hbm [shape: f32[2,8,32], index: 2, kind: input, shape index: {}]   ;;  %s2635_s3 = inlined_call_operand.hbm [shape: f32[32,32], index: 3, kind: input, shape index: {}]   ;;  %s2636_s4 = inlined_call_operand.vmem [shape: f32[1,32], index: 4, kind: input, shape index: {}]   ;;  %s2637_s5 = inlined_call_operand.hbm [shape: f32[4,8,32], index: 5, kind: input, shape index: {}]   ;;  %s2638_s6 = inlined_call_operand.vmem [shape: f32[1,32], index: 6, kind: input, shape index: {}]   ;;  %s2639_s7 = inlined_call_operand.hbm [shape: f32[2,8,32], index: 7, kind: output, shape index: {}]  }
   0x1   :  { %2655 = sst [smem:[#allocation21_spill]] %s2632_s0 }
   0x2   :  { %2656 = sst [smem:[#allocation22_spill]] %s2635_s3 }
   0x3   :  { %12 = vsyncpa [#allocation3], 0 }
   0x4   :  { %14 = vsyncpa [#allocation3 + $0x1], 0 }
   0x5   :  { %15 = vsyncpa [#allocation6], 0 }
   0x6   :  { %17 = vsyncpa [#allocation6 + $0x1], 0 }
   0x7   :  { %18 = vsyncpa [#allocation9], 0 }
   0x8   :  { %19 = vsyncpa [#allocation4], 0 }
   0x9   :  { %21 = vsyncpa [#allocation4 + $0x1], 0  ;;  %s2282_s24 = smov 0   ;;  %s2284_s25 = smov 0  }
   0xa   :  { %s2286_s26 = smov 0   ;;  %s2288_s27 = smov 0  }
   0xb LB: > { %2657 = sst [smem:[#allocation16_spill]] %s2215_s24  ;;  %s2303_s28 = sadd.s32 4294967295, %s2227_s27   ;;  %s2227_s27 = sphi %s2288_s27, %s2686_s27   ;;  %s2223_s26 = sphi %s2286_s26, %s2690_s26   ;;  %s2219_s25 = sphi %s2284_s25, %s2689_s25   ;;  %s2215_s24 = sphi %s2282_s24, %s2688_s24  }
   0xc   : > { %2658 = sst [smem:[#allocation17_spill]] %s2227_s27  ;;  %s1744_s29 = sadd.s32 4294967294, %s2227_s27  }
   0xd   : > { %p47_p0 = scmp.ne.s32.totalorder %s2219_s25, %s2215_s24  ;;  %p2645_p1 = scmp.eq.s32.totalorder %s2303_s28, 0 }
   0xe   : > { %p207_p2 = scmp.eq.s32.totalorder %s2303_s28, 1  ;;  %p213_p3 = scmp.eq.s32.totalorder %s1744_s29, 1 }
   0xf   : > { %p2312_p4 = por %p2645_p1, %p47_p0  ;;  %p1745_p5 = scmp.ge.s32.totalorder %s2227_s27, 1 }
  0x10   : > { %p2317_p6 = por %p213_p3, %p47_p0  ;;  %p220_p7 = scmp.lt.s32.totalorder %s2227_s27, 3 }
  0x11   : > { %s2659_s30 = scalar_select %p2312_p4, 1, 0 }
  0x12   : > { %s2660_s8 = scalar_select %p2317_p6, 1, 0 }
  0x13   : > { %p2322_p8 = pnand %p1745_p5, %p220_p7  ;;  %s2229_s10 = smov [#allocation8]  }
  0x14   : > { %2661 = sst [smem:[#allocation18_spill]] %s2660_s8  ;;  %s232_s11 = sshll.u32 %s2229_s10, 4  ;;  %s233_s11 = int_to_ptr.vmem [resolvable:$true] %s232_s11 }
  0x15   : > { %s2662_s9 = scalar_select %p2322_p8, 1, 0 }
  0x16   : > { %p1935_p9 = pneg %p2322_p8  ;;  %s2336_s13 = sadd.s32 1, %s2227_s27  }
  0x17   : > { %2664 = sst [smem:[#allocation19_spill]] %s2336_s13  ;;  %s34_s14 = sadd.s32 1, %s2223_s26 }
  0x18   : > { %p2331_p11 = pnand %p1935_p9, %p2645_p1  ;;  %s31_s15 = ssub.s32 %s2227_s27, %s2336_s13 }
  0x19   : > { %s2030_s16 = scalar_lea.vmem %s233_s11, 512  ;;  %p2038_p5 = scmp.lt.s32.totalorder %s233_s11, %s233_s11 }
  0x1a   : > { %s2663_s12 = scalar_select %p2331_p11, 1, 0 }
  0x1b   : > { %p2646_p12 = pneg %p2331_p11  ;;  %p2031_p13 = scmp.ne.s32.totalorder %s233_s11, %s2030_s16 }
  0x1c   : > { %p2039_p7 = scmp.lt.s32.totalorder %s2030_s16, %s2030_s16 }
  0x1d   : > { %p2033_p0 = pnand %p2031_p13, %p2646_p12 }
  0x1e   : > { %p2040_p9 = por %p2039_p7, %p2038_p5 }
  0x1f   : > { %p2034_p3 = pneg %p2033_p0 }
  0x21   : > { %p2041_p10 = pnand %p2040_p9, %p2034_p3 }
  0x23   : > { %2044 = shalt.err (!%p2041_p10)
}
  0x24   : > { %s2640_s17 = smov 128   ;;  %s2642_s18 = smov 8  }
  0x25   : > { %s2665_s3 = sld [smem:[#allocation22_spill]]  ;;  %p32_p10 = scmp.eq.s32.totalorder %s31_s15, 0 }
  0x26   : > { %p41_p13 = scmp.ne.s32.totalorder %s2223_s26, %s2219_s25  ;;  %p42_p0 = scmp.eq.s32.totalorder %s2227_s27, 0 }
  0x27   : > { %p1958_p3 = scmp.lt.s32.totalorder %s2227_s27, 2  ;;  %s2641_s23 = sand.u32 1, %s2223_s26  }
  0x28   : > { %s2359_s21 = scalar_select %p32_p10, %s2223_s26, %s34_s14  }
  0x29   : > { %p43_p5 = por %p42_p0, %p41_p13  ;;  %p2363_p7 = por %p207_p2, %p41_p13 }
  0x2a   : > { %2666 = sst [smem:[#allocation20_spill]] %s2359_s21  ;;  %s2369_s29 = sshll.u32 %s2227_s27, 7 }
  0x2b   : > { %1938 = dma.hbm_to_vmem [thread:$0]  (!%p2331_p11), %s2665_s3, 512, %s233_s11, [#allocation9], %s2640_s17, %s2640_s17, %s2642_s18  }
  0x2c   : > { %s2667_s22 = scalar_select %p2363_p7, 1, 0 }
  0x2d   : > { %s2373_s10 = sshll.u32 %s2641_s23, 3  ;;  %p2375_p9 = pnand %p1958_p3, %p43_p5 }
  0x2e   : > { %s283_s14 = sand.u32 1, %s2227_s27   ;;  %s2384_s19 = scalar_lea.hbm %s2633_s1, %s2369_s29 }
  0x2f   : > { %s287_s20 = scalar_lea.vmem [#allocation5], %s2373_s10  ;;  %s2387_s23 = scalar_lea.sflag [#allocation6], %s283_s14 }
  0x30   : > { %s294_s17 = sshll.u32 %s287_s20, 4  ;;  %s2045_s18 = scalar_lea.hbm %s2384_s19, 128  ;;  %s295_s17 = int_to_ptr.vmem [resolvable:$true] %s294_s17 }
  0x31   : > { %p2046_p2 = scmp.ne.s32.totalorder %s2384_s19, %s2045_s18  ;;  %p2393_p10 = pneg %p2375_p9 }
  0x32   : > { %s2050_s21 = scalar_lea.hbm %s2633_s1, 256  ;;  %p2051_p3 = scmp.lt.s32.totalorder %s2384_s19, %s2633_s1 }
  0x33   : > { %p2048_p13 = pnand %p2393_p10, %p2046_p2  ;;  %p2052_p5 = scmp.lt.s32.totalorder %s2050_s21, %s2045_s18 }
  0x35   : > { %p2049_p0 = pneg %p2048_p13  ;;  %p2053_p1 = por %p2052_p5, %p2051_p3 }
  0x37   : > { %p2054_p12 = pnand %p2053_p1, %p2049_p0 }
  0x39   : > { %2057 = shalt.err (!%p2054_p12)
}
  0x3a   : > { %s2058_s14 = scalar_lea.vmem %s295_s17, 128  ;;  %s2232_s27 = smov [#allocation5]  }
  0x3b   : > { %p2059_p6 = scmp.ne.s32.totalorder %s295_s17, %s2058_s14  ;;  %s2063_s8 = sshll.u32 %s2232_s27, 4  ;;  %s2064_s8 = int_to_ptr.vmem [resolvable:$false] %s2063_s8 }
  0x3c   : > { %s2065_s24 = scalar_lea.vmem %s2064_s8, 256  ;;  %p2066_p2 = scmp.lt.s32.totalorder %s295_s17, %s2064_s8 }
  0x3d   : > { %p2061_p7 = pnand %p2059_p6, %p2393_p10  ;;  %p2067_p13 = scmp.lt.s32.totalorder %s2065_s24, %s2058_s14 }
  0x3f   : > { %p2062_p4 = pneg %p2061_p7  ;;  %p2068_p8 = por %p2067_p13, %p2066_p2 }
  0x41   : > { %p2069_p11 = pnand %p2068_p8, %p2062_p4 }
  0x43   : > { %2072 = shalt.err (!%p2069_p11)
}
  0x44   : > { %1948 = dma.hbm_to_vmem [thread:$0]  (!%p2375_p9), %s2384_s19, 128, %s295_s17, %s2387_s23  }
  0x45   : > { %s2233_s13 = smov [#allocation10]   ;;  %p2670_p6 = scmp.ne.s32.totalorder %s2663_s12, 0 }
  0x46   : > { %s248_s18 = sshll.u32 %s2233_s13, 4  ;;  %s249_s18 = int_to_ptr.vmem [resolvable:$true] %s248_s18 }
  0x47   : > { %s2084_s21 = scalar_lea.vmem %s249_s18, 512  ;;  %p2671_p12 = pneg %p2670_p6 }
  0x48   : > { %p2085_p1 = scmp.ne.s32.totalorder %s249_s18, %s2084_s21  ;;  %p2092_p3 = scmp.lt.s32.totalorder %s249_s18, %s249_s18 }
  0x49   : > { %p2093_p5 = scmp.lt.s32.totalorder %s2084_s21, %s2084_s21 }
  0x4a   : > { %p2087_p7 = pnand %p2085_p1, %p2671_p12 }
  0x4b   : > { %p2094_p2 = por %p2093_p5, %p2092_p3 }
  0x4c   : > { %p2088_p0 = pneg %p2087_p7 }
  0x4e   : > { %p2095_p4 = pnand %p2094_p2, %p2088_p0 }
  0x50   : > { %2098 = shalt.err (!%p2095_p4)
}
  0x51   : > { %s2672_s24 = smov 8   ;;  %s2673_s27 = smov 128  }
  0x52   : > { %1941 = dma.hbm_to_vmem [thread:$0]  (!%p2670_p6), %s2637_s5, 512, %s249_s18, [#allocation9], %s2673_s27, %s2673_s27, %s2672_s24  }
  0x53   : > { %s2674_s0 = sld [smem:[#allocation21_spill]]  ;;  %s269_s12 = scalar_lea.vmem [#allocation2], %s2373_s10 }
  0x54   : > { %s276_s20 = sshll.u32 %s269_s12, 4  ;;  %s2675_s14 = sand.u32 1, %s2223_s26   ;;  %s277_s20 = int_to_ptr.vmem [resolvable:$true] %s276_s20 }
  0x55   : > { %s266_s13 = scalar_lea.sflag [#allocation3], %s2675_s14 }
  0x59   : > { %s2427_s16 = scalar_lea.hbm %s2674_s0, %s2369_s29  ;;  %s2104_s24 = scalar_lea.hbm %s2674_s0, 256 }
  0x5a   : > { %s2099_s21 = scalar_lea.hbm %s2427_s16, 128  ;;  %p2105_p1 = scmp.lt.s32.totalorder %s2427_s16, %s2674_s0 }
  0x5b   : > { %p2100_p8 = scmp.ne.s32.totalorder %s2427_s16, %s2099_s21  ;;  %p2106_p6 = scmp.lt.s32.totalorder %s2104_s24, %s2099_s21 }
  0x5d   : > { %p2102_p11 = pnand %p2100_p8, %p2393_p10  ;;  %p2107_p12 = por %p2106_p6, %p2105_p1 }
  0x5f   : > { %p2103_p13 = pneg %p2102_p11 }
  0x61   : > { %p2108_p7 = pnand %p2107_p12, %p2103_p13 }
  0x63   : > { %2111 = shalt.err (!%p2108_p7)
}
  0x64   : > { %s2112_s19 = scalar_lea.vmem %s277_s20, 128  ;;  %s2234_s15 = smov [#allocation2]  }
  0x65   : > { %p2113_p0 = scmp.ne.s32.totalorder %s277_s20, %s2112_s19  ;;  %s2117_s12 = sshll.u32 %s2234_s15, 4  ;;  %s2118_s12 = int_to_ptr.vmem [resolvable:$false] %s2117_s12 }
  0x66   : > { %s2119_s14 = scalar_lea.vmem %s2118_s12, 256  ;;  %p2120_p2 = scmp.lt.s32.totalorder %s277_s20, %s2118_s12 }
  0x67   : > { %p2115_p3 = pnand %p2113_p0, %p2393_p10  ;;  %p2121_p4 = scmp.lt.s32.totalorder %s2119_s14, %s2112_s19 }
  0x69   : > { %p2116_p5 = pneg %p2115_p3  ;;  %p2122_p8 = por %p2121_p4, %p2120_p2 }
  0x6b   : > { %p2123_p11 = pnand %p2122_p8, %p2116_p5 }
  0x6d   : > { %2126 = shalt.err (!%p2123_p11)
}
  0x6e   : > { %1945 = dma.hbm_to_vmem [thread:$0]  (!%p2375_p9), %s2427_s16, 128, %s277_s20, %s266_s13  }
  0x6f   : > { %s310_s18 = scalar_lea.hbm %s2634_s2, %s2369_s29  ;;  %s305_s24 = scalar_lea.vmem [#allocation7], %s2373_s10 }
  0x70   : > { %s312_s27 = sshll.u32 %s305_s24, 4  ;;  %s2127_s17 = scalar_lea.hbm %s310_s18, 128  ;;  %s313_s27 = int_to_ptr.vmem [resolvable:$true] %s312_s27 }
  0x71   : > { %p2128_p13 = scmp.ne.s32.totalorder %s310_s18, %s2127_s17  ;;  %s2132_s12 = scalar_lea.hbm %s2634_s2, 256 }
  0x72   : > { %p2133_p12 = scmp.lt.s32.totalorder %s310_s18, %s2634_s2  ;;  %p2134_p7 = scmp.lt.s32.totalorder %s2132_s12, %s2127_s17 }
  0x73   : > { %p2130_p1 = pnand %p2128_p13, %p2393_p10 }
  0x74   : > { %p2135_p0 = por %p2134_p7, %p2133_p12 }
  0x75   : > { %p2131_p6 = pneg %p2130_p1 }
  0x77   : > { %p2136_p3 = pnand %p2135_p0, %p2131_p6 }
  0x79   : > { %2139 = shalt.err (!%p2136_p3)
}
  0x7a   : > { %s2140_s29 = scalar_lea.vmem %s313_s27, 128  ;;  %s2235_s10 = smov [#allocation7]  }
  0x7b   : > { %p2141_p5 = scmp.ne.s32.totalorder %s313_s27, %s2140_s29  ;;  %s2145_s16 = sshll.u32 %s2235_s10, 4  ;;  %s2146_s16 = int_to_ptr.vmem [resolvable:$false] %s2145_s16 }
  0x7c   : > { %s2147_s20 = scalar_lea.vmem %s2146_s16, 256  ;;  %p2148_p8 = scmp.lt.s32.totalorder %s313_s27, %s2146_s16 }
  0x7d   : > { %p2143_p2 = pnand %p2141_p5, %p2393_p10  ;;  %p2149_p11 = scmp.lt.s32.totalorder %s2147_s20, %s2140_s29 }
  0x7f   : > { %p2144_p4 = pneg %p2143_p2  ;;  %p2150_p13 = por %p2149_p11, %p2148_p8 }
  0x81   : > { %p2151_p1 = pnand %p2150_p13, %p2144_p4 }
  0x83   : > { %2154 = shalt.err (!%p2151_p1)
}
  0x84   : > { %1951 = dma.hbm_to_vmem [thread:$0]  (!%p2375_p9), %s310_s18, 128, %s313_s27, %s2387_s23  }
  0x85   : > { %p2676_p6 = scmp.ne.s32.totalorder %s2662_s9, 0 }
  0x86   : > { %s2469_s0 = sand.u32 (!%p2676_p6), 1, %s2219_s25   ;;  %p2677_p10 = scmp.ne.s32.totalorder (!%p2676_p6), %s2659_s30, 0 }
  0x87   : > { %321 = sbr.rel (%p2676_p6) target bundleno = 1388 (0x56c), region = 48  ;;  %s2472_s3 = sshll.u32 (!%p2676_p6), %s2469_s0, 3 }
  0x88   : > { %s324_s13 = scalar_lea.sflag (!%p2676_p6), [#allocation3], %s2469_s0  ;;  %s327_s21 = scalar_lea.vmem (!%p2676_p6), [#allocation2], %s2472_s3 }
  0x8c   : > { %2198 = dma.done.wait (%p2677_p10), %s324_s13, 128  }
  0x8d   : > { %2200 = vsyncadd (%p2677_p10), %s324_s13, 4294967168  ;;  %s332_s9 = sand.u32 1, %s2303_s28   ;;  %s336_s11 = scalar_lea.vmem [#allocation5], %s2472_s3 }
  0x8e   : > { %s333_s23 = scalar_lea.sflag [#allocation6], %s332_s9 }
  0x8f   : > { %2202 = dma.done.wait (%p2677_p10), %s333_s23, 256  }
  0x90   : > { %2204 = vsyncadd (%p2677_p10), %s333_s23, 4294967040  ;;  %s345_s8 = scalar_lea.vmem [#allocation7], %s2472_s3  ;;  %p2678_p9 = scmp.eq.s32.totalorder %s2303_s28, 0 }
  0x92   : > { %2206 = dma.done.wait (%p2678_p9), [#allocation9], 1024   ;;  %p2679_p12 = pmov %p2678_p9 }
  0x93   : > { %v2236_v0 = vmov 0.0   ;;  %vm2237_vm0 = vmmov 0   ;;  %v397_v1 = vld [vmem:[#allocation8 + $0x18] sm:$0xff]  ;;  %v396_v2 = vld [vmem:[#allocation8 + $0x10] sm:$0xff]  ;;  %v395_v3 = vld [vmem:[#allocation8 + $0x8] sm:$0xff]  ;;  %vm406_vm1 = vcmask 261120  }
  0x94   : > { %2208 = vsyncadd (%p2679_p12), [#allocation9], 4294966272  ;;  %1837 = vmatprep.subr.mxu1 %v2236_v0  ;;  %1826 = vmatprep.subr.mxu0 %v2236_v0  ;;  %v394_v4 = vld [vmem:[#allocation8] sm:$0xff]  ;;  %v399_v6 = vld [vmem:[%s327_s21] sm:$0xff]  ;;  %vm657_vm2 = vcmask 64512   ;;  %s2238_s24 = smov 104  }
  0x95   : > { %1845 = vmatprep.mubr.msk.f32.mxu1 %vm2237_vm0, %v2236_v0  ;;  %1834 = vmatprep.mubr.msk.f32.mxu0 %vm2237_vm0, %v2236_v0  ;;  %v481_v5 = vld [vmem:[%s336_s11] sm:$0xff]  ;;  %v555_v7 = vld [vmem:[%s345_s8] sm:$0xff]  ;;  %s2239_s27 = smov 120   ;;  %s2240_s17 = smov 112  }
  0x96   : > { %1838 = vmatpush3.msra.mxu1 %v397_v1  ;;  %1827 = vmatpush3.msra.mxu0 %v397_v1  ;;  %v1762_v8 = vld [vmem:[%s2636_s4] ss:$0 sm:$0xff]  ;;  %s1784_s12 = sshll.u32 %s2303_s28, 7  ;;  %s393_s14 = scalar_lea.vmem [#allocation11], %s2472_s3 }
  0x97   : > { %1839 = vmatprep.subr.mxu1 %v2236_v0  ;;  %1828 = vmatprep.subr.mxu0 %v2236_v0  ;;  %s1612_s29 = sshll.u32 %s393_s14, 4  ;;  %s1610_s20 = scalar_lea.hbm %s2639_s7, %s1784_s12  ;;  %s1613_s29 = int_to_ptr.vmem [resolvable:$true] %s1612_s29 }
  0x98   : > { %1840 = vmatpush3.msra.mxu1 %v396_v2  ;;  %1829 = vmatpush3.msra.mxu0 %v396_v2  ;;  %s1599_s13 = scalar_lea.sflag [#allocation4], %s2469_s0  ;;  %s2155_s21 = scalar_lea.vmem %s1613_s29, 128 }
  0x99   : > { %1841 = vmatprep.subr.mxu1 %v2236_v0  ;;  %1830 = vmatprep.subr.mxu0 %v2236_v0  ;;  %p2156_p7 = scmp.ne.s32.totalorder %s1613_s29, %s2155_s21  ;;  %p2680_p0 = scmp.ne.s32.totalorder %s2667_s22, 0 }
  0x9a   : > { %1842 = vmatpush3.msra.mxu1 %v395_v3  ;;  %1831 = vmatpush3.msra.mxu0 %v395_v3  ;;  %s2241_s9 = smov [#allocation11]  }
  0x9b   : > { %1843 = vmatprep.subr.mxu1 %v2236_v0  ;;  %1832 = vmatprep.subr.mxu0 %v2236_v0  ;;  %p2157_p3 = pnand %p2156_p7, %p2680_p0  ;;  %s2159_s28 = sshll.u32 %s2241_s9, 4  ;;  %s2160_s28 = int_to_ptr.vmem [resolvable:$false] %s2159_s28 }
  0x9c   : > { %1844 = vmatpush3.msra.mxu1 %v394_v4  ;;  %1833 = vmatpush3.msra.mxu0 %v394_v4  ;;  %s2161_s3 = scalar_lea.vmem %s2160_s28, 256  ;;  %p2162_p2 = scmp.lt.s32.totalorder %s1613_s29, %s2160_s28 }
  0x9d   : > { %1846 = vmatmul.mubr.msk.f32.vlgmr.msra.gmra.mxu1 %vm406_vm1, %v481_v5  ;;  %1835 = vmatmul.mubr.msk.f32.vlgmr.msra.gmra.mxu0 %vm406_vm1, %v399_v6  ;;  %p2158_p5 = pneg %p2157_p3  ;;  %p2163_p4 = scmp.lt.s32.totalorder %s2161_s3, %s2155_s21 }
  0x9e   : > { %1859 = vmatprep.subr.mxu1 %v2236_v0  ;;  %1861 = vmatprep.mubr.msk.f32.mxu1 %vm2237_vm0, %v2236_v0 }
  0x9f   : > { %1848 = vmatprep.subr.mxu0 %v2236_v0  ;;  %1856 = vmatprep.mubr.msk.f32.mxu0 %vm2237_vm0, %v2236_v0  ;;  %p2164_p8 = por %p2163_p4, %p2162_p2 }
  0xa0   : > { %1849 = vmatpush3.msra.mxu0 %v397_v1 }
  0xa1   : > { %1850 = vmatprep.subr.mxu0 %v2236_v0  ;;  %p2165_p11 = pnand %p2164_p8, %p2158_p5 }
  0xa2   : > { %1851 = vmatpush3.msra.mxu0 %v396_v2 }
  0xa3   : > { %1852 = vmatprep.subr.mxu0 %v2236_v0 }
  0xa4   : > { %1853 = vmatpush3.msra.mxu0 %v395_v3 }
  0xa5   : > { %1854 = vmatprep.subr.mxu0 %v2236_v0 }
  0xa6   : > { %1855 = vmatpush3.msra.mxu0 %v394_v4 }
  0xa7   : > { %1869 = vmatprep.subr.mxu0 %v2236_v0  ;;  %1857 = vmatmul.mubr.msk.f32.vlgmr.msra.gmra.mxu0 %vm406_vm1, %v555_v7  ;;  %v629_v7 = vld [vmem:[#allocation10] sm:$0xff] }
  0xa8   : > { %1871 = vmatprep.mubr.msk.f32.mxu0 %vm2237_vm0, %v2236_v0 }
 0x15d   : > { %v551_v9 = vpop.f32.mrf.mxu1  ;;  %v476_v10 = vpop.f32.mrf.mxu0 }
 0x15e   : > { %v552_v11 = vadd.f32 %v1762_v8, %v551_v9  ;;  %v477_v12 = vadd.f32 %v1762_v8, %v476_v10  ;;  %v630_v10 = vld [vmem:[#allocation10 + $0x8] sm:$0xff] }
 0x15f   : > { %v1847_v13 = vpop.f32.mrf.mxu1  ;;  %v1836_v14 = vpop.f32.mrf.mxu0 }
 0x160   : > { %v480_v15 = vmul.f32 0.35355338, %v477_v12  ;;  %645 = vrot.lane.b32.xlu1 %v552_v11, %s2238_s24  ;;  %641 = vrot.lane.b32.xlu0 %v552_v11, %s2239_s27  ;;  %v632_v14 = vld [vmem:[#allocation10 + $0x18] sm:$0xff] }
 0x161   : > { %1860 = vmatpush3.xpose.msk.msra.mxu1 %vm657_vm2, %v552_v11 }
 0x162   : > { %1864 = vmatprep.subr.mxu1 %v2236_v0 }
 0x164   : > { %1862 = vmatmul.mubr.msk.f32.vlgmr.msra.gmra.mxu1 %vm657_vm2, %v480_v15  ;;  %643 = vrot.lane.b32.xlu0 %v552_v11, %s2240_s17  ;;  %v631_v11 = vld [vmem:[#allocation10 + $0x10] sm:$0xff] }
 0x165   : > { %634 = vrot.lane.b32.xlu1 %v480_v15, %s2239_s27  ;;  %1866 = vmatprep.mubr.msk.f32.mxu1 %vm2237_vm0, %v2236_v0 }
 0x167   : > { %v625_v22 = vpop.f32.mrf.mxu0 }
 0x168   : > { %636 = vrot.lane.b32.xlu0 %v480_v15, %s2240_s17  ;;  %v626_v23 = vadd.f32 %v1762_v8, %v625_v22 }
 0x169   : > { %638 = vrot.lane.b32.xlu1 %v480_v15, %s2238_s24  ;;  %v1858_v24 = vpop.f32.mrf.mxu0 }
 0x1d2   : > { %v646_v16 = vpop.permute.xlu1 %645  ;;  %v642_v17 = vpop.permute.xlu0 %641 }
 0x1d3   : > { %1865 = vmatpush3.xpose.msk.msra.mxu1 %vm657_vm2, %v642_v17 }
 0x1d4   : > { %1874 = vmatprep.subr.mxu1 %v2236_v0 }
 0x1d6   : > { %v644_v18 = vpop.permute.xlu0 %643 }
 0x1d7   : > { %v635_v19 = vpop.permute.xlu1 %634  ;;  %1870 = vmatpush3.xpose.msk.msra.mxu0 %vm657_vm2, %v644_v18 }
 0x1d8   : > { %1867 = vmatmul.mubr.msk.f32.vlgmr.msra.gmra.mxu1 %vm657_vm2, %v635_v19  ;;  %1879 = vmatprep.subr.mxu0 %v2236_v0 }
 0x1d9   : > { %1875 = vmatpush3.xpose.msk.msra.mxu1 %vm657_vm2, %v646_v16  ;;  %1876 = vmatprep.mubr.msk.f32.mxu1 %vm2237_vm0, %v2236_v0 }
 0x1da   : > { %v637_v20 = vpop.permute.xlu0 %636  ;;  %1884 = vmatprep.subr.mxu1 %v2236_v0 }
 0x1db   : > { %v639_v21 = vpop.permute.xlu1 %638  ;;  %1872 = vmatmul.mubr.msk.f32.vlgmr.msra.gmra.mxu0 %vm657_vm2, %v637_v20 }
 0x1dc   : > { %1877 = vmatmul.mubr.msk.f32.vlgmr.msra.gmra.mxu1 %vm657_vm2, %v639_v21  ;;  %1881 = vmatprep.mubr.msk.f32.mxu0 %vm2237_vm0, %v2236_v0 }
 0x1dd   : > { %1886 = vmatprep.mubr.msk.f32.mxu1 %vm2237_vm0, %v2236_v0  ;;  %1880 = vmatpush3.msra.mxu0 %v626_v23 }
 0x1de   : > { %1889 = vmatprep.subr.mxu0 %v2236_v0 }
 0x224   : > { %v728_v25 = vpop.f32.mrf.mxu1 }
 0x225   : > { %v954_v26 = vsel %vm657_vm2, %v728_v25, -inf }
 0x226   : > { %955 = vmax.xlane.f32.xlu0 %v954_v26  ;;  %v1863_v27 = vpop.f32.mrf.mxu1 }
 0x298   : > { %v802_v28 = vpop.f32.mrf.mxu1 }
 0x299   : > { %v957_v29 = vsel %vm657_vm2, %v802_v28, -inf }
 0x29a   : > { %958 = vmax.xlane.f32.xlu1 %v957_v29  ;;  %v1868_v30 = vpop.f32.mrf.mxu1 }
 0x29b   : > { %v876_v31 = vpop.f32.mrf.mxu0 }
 0x29c   : > { %v950_v32 = vpop.f32.mrf.mxu1  ;;  %v960_v33 = vsel %vm657_vm2, %v876_v31, -inf }
 0x29d   : > { %961 = vmax.xlane.f32.xlu0 %v960_v33  ;;  %v1873_v34 = vpop.f32.mrf.mxu0  ;;  %v963_v36 = vsel %vm657_vm2, %v950_v32, -inf  ;;  %v1782_v33 = vld [vmem:[%s2638_s6] ss:$0 sm:$0xff] }
 0x29e   : > { %v1878_v35 = vpop.f32.mrf.mxu1 }
 0x2a1   : > { %964 = vmax.xlane.f32.xlu0 %v963_v36 }
 0x2ab   : > { %648 = vrot.lane.b32.xlu1 %v626_v23, %s2239_s27 }
 0x2af   : > { %v956_v37 = vpop.xlane.xlu0 %955 }
 0x2b0   : > { %v966_v38 = vsub.f32 %v728_v25, %v956_v37 }
 0x2b2   : > { %v970_v39 = vmul.f32 1.442695, %v966_v38 }
 0x2b4   : > { %2003 = vpow2.f32 %v970_v39 }
 0x2c1   : > { %v2004_v40 = vpop.eup %2003 }
 0x2c2   : > { %v978_v41 = vsel %vm657_vm2, %v2004_v40, 0.0 }
 0x2cf   : > { %979 = vadd.xlane.f32.xlu1 %v978_v41 }
 0x323   : > { %v959_v42 = vpop.xlane.xlu1 %958 }
 0x324   : > { %v967_v43 = vsub.f32 %v802_v28, %v959_v42 }
 0x326   : > { %v972_v44 = vmul.f32 1.442695, %v967_v43  ;;  %v962_v45 = vpop.xlane.xlu0 %961 }
 0x327   : > { %v649_v46 = vpop.permute.xlu1 %648  ;;  %v968_v47 = vsub.f32 %v876_v31, %v962_v45 }
 0x328   : > { %2005 = vpow2.f32 %v972_v44  ;;  %1885 = vmatpush3.msra.mxu1 %v649_v46 }
 0x329   : > { %v974_v48 = vmul.f32 1.442695, %v968_v47  ;;  %1894 = vmatprep.subr.mxu1 %v2236_v0 }
 0x32a   : > { %v965_v49 = vpop.xlane.xlu0 %964 }
 0x32b   : > { %2007 = vpow2.f32 %v974_v48  ;;  %v969_v50 = vsub.f32 %v950_v32, %v965_v49 }
 0x32d   : > { %v976_v51 = vmul.f32 1.442695, %v969_v50 }
 0x32f   : > { %2009 = vpow2.f32 %v976_v51 }
 0x335   : > { %v2006_v52 = vpop.eup %2005 }
 0x336   : > { %v981_v53 = vsel %vm657_vm2, %v2006_v52, 0.0 }
 0x337   : > { %982 = vadd.xlane.f32.xlu0 %v981_v53 }
 0x338   : > { %v2008_v54 = vpop.eup %2007 }
 0x339   : > { %v984_v55 = vsel %vm657_vm2, %v2008_v54, 0.0 }
 0x33a   : > { %985 = vadd.xlane.f32.xlu1 %v984_v55 }
 0x33c   : > { %v2010_v56 = vpop.eup %2009 }
 0x33d   : > { %v987_v57 = vsel %vm657_vm2, %v2010_v56, 0.0 }
 0x33e   : > { %988 = vadd.xlane.f32.xlu0 %v987_v57 }
 0x34b   : > { %654 = vrot.lane.b32.xlu1 %v626_v23, %s2238_s24 }
 0x354   : > { %651 = vrot.lane.b32.xlu0 %v626_v23, %s2240_s17 }
 0x358   : > { %v980_v58 = vpop.xlane.xlu1 %979 }
 0x359   : > { %2011 = vrcp.f32 %v980_v58 }
 0x366   : > { %v2012_v59 = vpop.eup %2011 }
 0x367   : > { %v994_v60 = vmul.f32 %v2012_v59, %v2004_v40 }
 0x369   : > { %1882 = vmatmul.mubr.msk.f32.vlgmr.msra.gmra.mxu0 %vm657_vm2, %v994_v60 }
 0x36a   : > { %1891 = vmatprep.mubr.msk.f32.mxu0 %vm2237_vm0, %v2236_v0 }
 0x3c0   : > { %v983_v61 = vpop.xlane.xlu0 %982 }
 0x3c1   : > { %2013 = vrcp.f32 %v983_v61 }
 0x3c3   : > { %v986_v62 = vpop.xlane.xlu1 %985 }
 0x3c4   : > { %2015 = vrcp.f32 %v986_v62 }
 0x3c7   : > { %v989_v63 = vpop.xlane.xlu0 %988  ;;  %v655_v5 = vpop.permute.xlu1 %654 }
 0x3c8   : > { %2017 = vrcp.f32 %v989_v63 }
 0x3cb   : > { %v652_v1 = vpop.permute.xlu0 %651 }
 0x3cc   : > { %1890 = vmatpush3.msra.mxu0 %v652_v1 }
 0x3cd   : > { %1899 = vmatprep.subr.mxu0 %v2236_v0 }
 0x3ce   : > { %v2014_v2 = vpop.eup %2013 }
 0x3cf   : > { %v995_v3 = vmul.f32 %v2014_v2, %v2006_v52 }
 0x3d1   : > { %v2016_v4 = vpop.eup %2015  ;;  %1887 = vmatmul.mubr.msk.f32.vlgmr.msra.gmra.mxu1 %vm657_vm2, %v995_v3 }
 0x3d2   : > { %1895 = vmatpush3.msra.mxu1 %v655_v5  ;;  %v996_v6 = vmul.f32 %v2016_v4, %v2008_v54  ;;  %1896 = vmatprep.mubr.msk.f32.mxu1 %vm2237_vm0, %v2236_v0 }
 0x3d3   : > { %1904 = vmatprep.subr.mxu1 %v2236_v0 }
 0x3d4   : > { %1892 = vmatmul.mubr.msk.f32.vlgmr.msra.gmra.mxu0 %vm657_vm2, %v996_v6 }
 0x3d5   : > { %v2018_v8 = vpop.eup %2017  ;;  %1900 = vmatpush3.msra.mxu0 %v629_v7  ;;  %1901 = vmatprep.mubr.msk.f32.mxu0 %vm2237_vm0, %v2236_v0 }
 0x3d6   : > { %v997_v9 = vmul.f32 %v2018_v8, %v2010_v56  ;;  %1909 = vmatprep.subr.mxu0 %v2236_v0 }
 0x3d8   : > { %1897 = vmatmul.mubr.msk.f32.vlgmr.msra.gmra.mxu1 %vm657_vm2, %v997_v9 }
 0x3d9   : > { %1906 = vmatprep.mubr.msk.f32.mxu1 %vm2237_vm0, %v2236_v0  ;;  %1905 = vmatpush3.msra.mxu1 %v630_v10 }
 0x3da   : > { %1914 = vmatprep.subr.mxu1 %v2236_v0 }
 0x429   : > { %v1067_v12 = vpop.f32.mrf.mxu0 }
 0x42a   : > { %1902 = vmatmul.mubr.msk.f32.vlgmr.msra.gmra.mxu0 %vm657_vm2, %v1067_v12 }
 0x42b   : > { %v1883_v13 = vpop.f32.mrf.mxu0  ;;  %1910 = vmatpush3.msra.mxu0 %v631_v11  ;;  %1911 = vmatprep.mubr.msk.f32.mxu0 %vm2237_vm0, %v2236_v0 }
 0x491   : > { %v1140_v15 = vpop.f32.mrf.mxu1 }
 0x492   : > { %1907 = vmatmul.mubr.msk.f32.vlgmr.msra.gmra.mxu1 %vm657_vm2, %v1140_v15 }
 0x493   : > { %v1888_v16 = vpop.f32.mrf.mxu1  ;;  %1915 = vmatpush3.msra.mxu1 %v632_v14  ;;  %1916 = vmatprep.mubr.msk.f32.mxu1 %vm2237_vm0, %v2236_v0 }
 0x494   : > { %v1213_v17 = vpop.f32.mrf.mxu0 }
 0x495   : > { %1912 = vmatmul.mubr.msk.f32.vlgmr.msra.gmra.mxu0 %vm657_vm2, %v1213_v17 }
 0x496   : > { %v1893_v18 = vpop.f32.mrf.mxu0 }
 0x498   : > { %v1286_v19 = vpop.f32.mrf.mxu1 }
 0x499   : > { %1917 = vmatmul.mubr.msk.f32.vlgmr.msra.gmra.mxu1 %vm657_vm2, %v1286_v19 }
 0x49a   : > { %v1898_v20 = vpop.f32.mrf.mxu1 }
 0x4ea   : > { %v1359_v21 = vpop.f32.mrf.mxu0 }
 0x4eb   : > { %v1582_v27 = vsel %vm406_vm1, %v1359_v21, 0.0 }
 0x4ec   : > { %v1903_v22 = vpop.f32.mrf.mxu0 }
 0x552   : > { %v1432_v23 = vpop.f32.mrf.mxu1 }
 0x553   : > { %v1583_v24 = vsel %vm406_vm1, %v1432_v23, 0.0 }
 0x554   : > { %v1908_v25 = vpop.f32.mrf.mxu1  ;;  %v1584_v28 = vadd.f32 %v1583_v24, %v1582_v27 }
 0x555   : > { %v1505_v26 = vpop.f32.mrf.mxu0 }
 0x556   : > { %v1585_v0 = vsel %vm406_vm1, %v1505_v26, 0.0 }
 0x557   : > { %v1913_v29 = vpop.f32.mrf.mxu0  ;;  %v1586_v30 = vadd.f32 %v1585_v0, %v1584_v28 }
 0x559   : > { %v1578_v31 = vpop.f32.mrf.mxu1 }
 0x55a   : > { %v1587_v32 = vsel %vm406_vm1, %v1578_v31, 0.0 }
 0x55b   : > { %v1588_v34 = vadd.f32 %v1587_v32, %v1586_v30  ;;  %v1918_v35 = vpop.f32.mrf.mxu1 }
 0x55d   : > { %v1596_v36 = vadd.f32 %v1782_v33, %v1588_v34 }
 0x55f   : > { %1597 = vst.msk [vmem:[%s393_s14] sm:$0xff] %vm406_vm1, %v1596_v36 }
 0x560   : > { %2168 = shalt.err (!%p2165_p11)
}
 0x561   : > { %s2169_s23 = scalar_lea.hbm %s1610_s20, 128  ;;  %s2173_s8 = scalar_lea.hbm %s2639_s7, 256 }
 0x562   : > { %p2170_p13 = scmp.ne.s32.totalorder %s1610_s20, %s2169_s23  ;;  %p2174_p10 = scmp.lt.s32.totalorder %s1610_s20, %s2639_s7 }
 0x563   : > { %p2175_p9 = scmp.lt.s32.totalorder %s2173_s8, %s2169_s23 }
 0x564   : > { %p2171_p1 = pnand %p2170_p13, %p2680_p0 }
 0x565   : > { %p2176_p12 = por %p2175_p9, %p2174_p10 }
 0x566   : > { %p2172_p6 = pneg %p2171_p1 }
 0x568   : > { %p2177_p7 = pnand %p2176_p12, %p2172_p6 }
 0x56a   : > { %2180 = shalt.err (!%p2177_p7)
}
 0x56b   : > { %1933 = dma.vmem_to_hbm [thread:$0]  (%p2680_p0), %s1613_s29, 128, %s1610_s20, %s1599_s13  }
 0x56c PF: > { %s2681_s24 = sld [smem:[#allocation16_spill]] }
 0x56d   : > { %s2682_s27 = sld [smem:[#allocation18_spill]] }
 0x56e   : > { %s2683_s17 = sld [smem:[#allocation17_spill]] }
 0x572   : > { %s1624_s19 = sand.u32 1, %s2681_s24  }
 0x573   : > { %p2684_p3 = scmp.ne.s32.totalorder %s2682_s27, 0  ;;  %s1625_s15 = scalar_lea.sflag [#allocation4], %s1624_s19 }
 0x574   : > { %p2685_p5 = scmp.ge.s32.totalorder %s2683_s17, 2 }
 0x576   : > { %p1953_p2 = pnand %p2685_p5, %p2684_p3 }
 0x578   : > { %p1954_p4 = pneg %p1953_p2 }
 0x57a   : > { %2210 = dma.done.wait (%p1954_p4), %s1625_s15, 128  }
 0x57b   : > { %2212 = vsyncadd (%p1954_p4), %s1625_s15, 4294967168  ;;  %s2686_s27 = sld [smem:[#allocation19_spill]]  ;;  %s2688_s24 = smov %s2219_s25 }
 0x57c   : > { %s2687_s12 = sld [smem:[#allocation20_spill]]  ;;  %s2689_s25 = smov %s2223_s26 }
 0x581   : > { %p24_p8 = scmp.ge.s32.totalorder %s2686_s27, 4  }
 0x582   : > { %s2690_s26 = smov %s2687_s12 }
 0x583   :  { %26 = sbr.rel (!%p24_p8) target bundleno = 11 (0xb), region = 125 }
 0x588   :  { %1630 = vsyncpa [#allocation3], 1 }
 0x589   :  { %1632 = vsyncpa [#allocation3 + $0x1], 1 }
 0x58a   :  { %1633 = vsyncpa [#allocation6], 1 }
 0x58b   :  { %1635 = vsyncpa [#allocation6 + $0x1], 1 }
 0x58c   :  { %1636 = vsyncpa [#allocation9], 1 }
 0x58d   :  { %1637 = vsyncpa [#allocation4], 1 }
 0x58e   :  { %1639 = vsyncpa [#allocation4 + $0x1], 1 }

</bundles_post_ra>
